<compile_context>
chip_gen: v7x
topology: tpu7x:2x2x1
jax: 0.10.0
libtpu: 0.0.40
codegen_flags: <defaults>
</compile_context>

<pallas_src>
import functools

import jax
import jax.numpy as jnp
from jax.experimental import pallas as pl
from jax.experimental.pallas import tpu as pltpu


def _focal_tversky_kernel(x_ref, t_ref, o_ref, *, r_tile, n_rows, mask_rows):
    r = pl.program_id(1)

    @pl.when(r == 0)
    def _():
        o_ref[...] = jnp.zeros_like(o_ref)

    x = x_ref[...].astype(jnp.float32)          # (C, rt, 128) logits
    t = t_ref[...].astype(jnp.float32)          # (C, rt, 128) targets in {0,1}

    if mask_rows:
        # last row-tile may extend past the array; neutralise invalid rows so
        # they contribute exactly 0 to every partial sum (x=-1e4 -> p=0, bce=0)
        row_ids = jax.lax.broadcasted_iota(jnp.int32, (1, r_tile, 1), 1)
        valid = (r * r_tile + row_ids) < n_rows
        x = jnp.where(valid, x, -1e4)
        t = jnp.where(valid, t, 0.0)

    # ---- shared transcendentals ----
    e = jnp.exp(-jnp.abs(x))                                  # EUP
    bce = jnp.maximum(x, 0.0) - x * t + jnp.log1p(e)          # stable BCEWithLogits

    # sigmoid via approx reciprocal (EUP slot) + one Newton step (~1e-7 rel err)
    d = 1.0 + e
    inv = pl.reciprocal(d, approx=True)
    inv = inv * (2.0 - d * inv)
    p = jnp.where(x >= 0.0, inv, e * inv)                     # sigmoid(x)

    # ---- Focal (gamma=2, alpha=None): 1 - pt = p + t - 2*p*t for t in {0,1} ----
    pt_prod = p * t                                           # reused for Tversky
    one_m_pt = (p + t) - 2.0 * pt_prod
    focal = one_m_pt * one_m_pt * bce

    # ---- per-class, lane-wide partial sums (sublane reduce only) ----
    o_ref[0] += jnp.sum(pt_prod, axis=1)                      # sum(p * t)  (C, 128)
    o_ref[1] += jnp.sum(p, axis=1)                            # sum(p)
    o_ref[2] += jnp.sum(t, axis=1)                            # sum(t)
    o_ref[3] += jnp.sum(focal, axis=1)                        # focal partial


def focal_and_tversky_loss(y_pred, y_true, *, block_bytes=2 * 1024 * 1024):
    """y_pred: logits (B, C, H, W); y_true: {0,1} targets (B, C, H, W)."""
    B, C, H, W = y_pred.shape
    P = H * W
    n_elems = float(B * C * P)

    # ---- free NCHW view as (B, C, rows, 128); rows = pixel axis / 128 ----
    NPr = pl.cdiv(P, 128)
    P128 = NPr * 128
    x = y_pred.reshape(B, C, P)
    t = y_true.reshape(B, C, P)
    if P128 != P:
        # TODO(synk): fold this lane-boundary pad into the kernel (3-D blocks +
        # lane mask) to avoid a full-tensor HBM copy when H*W % 128 != 0.
        x = jnp.pad(x, ((0, 0), (0, 0), (0, P128 - P)),
                    constant_values=jnp.asarray(-1e4, dtype=x.dtype))
        t = jnp.pad(t, ((0, 0), (0, 0), (0, P128 - P)))
    x = x.reshape(B, C, NPr, 128)
    t = t.reshape(B, C, NPr, 128)

    # ---- row-tile size from VMEM budget (~block_bytes per input block) ----
    itemsize = max(jnp.dtype(x.dtype).itemsize, jnp.dtype(t.dtype).itemsize)
    rt_cap = max(8, block_bytes // (C * 128 * itemsize))
    if NPr <= rt_cap:
        rt, mask_rows = NPr, False            # full dim: no (8,128) constraint
    else:
        best = 0
        for div in range(8, (rt_cap // 8) * 8 + 1, 8):
            if NPr % div == 0:
                best = div
        if best >= max(8, rt_cap // 2):
            rt, mask_rows = best, False       # exact multiple-of-8 divisor
        else:
            rt, mask_rows = (rt_cap // 8) * 8, True   # mask last partial tile
    grid_r = pl.cdiv(NPr, rt)

    kernel = functools.partial(_focal_tversky_kernel,
                               r_tile=rt, n_rows=NPr, mask_rows=mask_rows)

    # per-batch (4, C, 128) partial sums; batch axis "parallel" => both v7x TCs
    partials = pl.pallas_call(
        kernel,
        out_shape=jax.ShapeDtypeStruct((B, 4, C, 128), jnp.float32),
        grid_spec=pltpu.PrefetchScalarGridSpec(
            num_scalar_prefetch=0,
            grid=(B, grid_r),
            in_specs=[
                pl.BlockSpec((None, C, rt, 128), lambda b, r: (b, 0, r, 0)),
                pl.BlockSpec((None, C, rt, 128), lambda b, r: (b, 0, r, 0)),
            ],
            out_specs=pl.BlockSpec((None, 4, C, 128), lambda b, r: (b, 0, 0, 0)),
        ),
        compiler_params=pltpu.CompilerParams(
            dimension_semantics=("parallel", "arbitrary")),
    )(x, t)

    # ---- tiny epilogue on (B, 4, C, 128) partials ----
    sums = jnp.sum(partials, axis=(0, 3))                 # (4, C)
    inter, psum, tsum, focal_sum = sums[0], sums[1], sums[2], sums[3]
    fp = psum - inter
    fn = tsum - inter
    eps = 1e-7
    score = inter / jnp.maximum(inter + 0.5 * fp + 0.5 * fn, eps)
    # classes with no positive pixels contribute 0 (smp behaviour)
    per_class = (1.0 - score) * (tsum > 0.0).astype(jnp.float32)
    tversky_loss = jnp.sum(per_class) / C
    focal_loss = jnp.sum(focal_sum) / n_elems
    return 0.5 * focal_loss + 0.5 * tversky_loss


def _reference_loss(y_pred, y_true):
    """Pure-JAX reference matching smp FocalLoss + TverskyLoss (multilabel)."""
    x = y_pred.astype(jnp.float32)
    t = y_true.astype(jnp.float32)
    bce = jnp.maximum(x, 0.0) - x * t + jnp.log1p(jnp.exp(-jnp.abs(x)))
    pt = jnp.exp(-bce)
    focal = jnp.mean((1.0 - pt) ** 2 * bce)

    B, C, H, W = x.shape
    p = jnp.transpose(jax.nn.sigmoid(x), (1, 0, 2, 3)).reshape(C, -1)
    tt = jnp.transpose(t, (1, 0, 2, 3)).reshape(C, -1)
    inter = jnp.sum(p * tt, axis=1)
    fp = jnp.sum(p * (1.0 - tt), axis=1)
    fn = jnp.sum((1.0 - p) * tt, axis=1)
    eps = 1e-7
    score = inter / jnp.maximum(inter + 0.5 * fp + 0.5 * fn, eps)
    per_class = (1.0 - score) * (jnp.sum(tt, axis=1) > 0).astype(jnp.float32)
    tversky = jnp.mean(per_class)
    return 0.5 * focal + 0.5 * tversky


if __name__ == "__main__":
    key = jax.random.PRNGKey(0)
    k1, k2 = jax.random.split(key)
    shape = (2, 4, 16, 16)                      # (B, C, H, W)
    y_pred = jax.random.normal(k1, shape, jnp.float32)          # logits
    y_true = jax.random.bernoulli(k2, 0.5, shape).astype(jnp.float32)

    loss = focal_and_tversky_loss(y_pred, y_true)
    loss = jax.block_until_ready(loss)

    ref = _reference_loss(y_pred, y_true)
    assert abs(float(loss) - float(ref)) < 1e-5, (float(loss), float(ref))
    print("KERNEL_OK")
</pallas_src>

<mosaic_0001>
module attributes {stable_mosaic.version = 11 : i64} {
  func.func @_focal_tversky_kernel(%arg0: i32, %arg1: i32, %arg2: memref<1x4x2x128xf32, #tpu.memory_space<vmem>>, %arg3: memref<1x4x2x128xf32, #tpu.memory_space<vmem>>, %arg4: memref<1x4x4x128xf32, #tpu.memory_space<vmem>>) attributes {dimension_semantics = [#tpu.dimension_semantics<parallel>, #tpu.dimension_semantics<arbitrary>], iteration_bounds = array<i64: 2, 1>, scalar_prefetch = 0 : i64, scratch_operands = 0 : i64, tpu.core_type = #tpu.core_type<tc>, window_params = [{transform_indices = @transform_0, window_bounds = array<i64: 1, 4, 2, 128>}, {transform_indices = @transform_1, window_bounds = array<i64: 1, 4, 2, 128>}, {transform_indices = @transform_2, window_bounds = array<i64: 1, 4, 4, 128>}]} {
    %c0_i32 = arith.constant 0 : i32
    %0 = arith.cmpi eq, %arg1, %c0_i32 : i32
    %1 = arith.extui %0 : i1 to i32
    %c0_i32_0 = arith.constant 0 : i32
    %2 = arith.cmpi ne, %1, %c0_i32_0 : i32
    scf.if %2 {
      %cst_46 = arith.constant 0.000000e+00 : f32
      %63 = vector.broadcast %cst_46 : f32 to vector<4x4x128xf32>
      %c0_47 = arith.constant 0 : index
      %c0_48 = arith.constant 0 : index
      %c0_49 = arith.constant 0 : index
      %c0_50 = arith.constant 0 : index
      %64 = vector.load %arg4[%c0_47, %c0_48, %c0_49, %c0_50] : memref<1x4x4x128xf32, #tpu.memory_space<vmem>>, vector<1x4x4x128xf32>
      %65 = vector.shape_cast %64 : vector<1x4x4x128xf32> to vector<4x4x128xf32>
      %66 = vector.shape_cast %63 : vector<4x4x128xf32> to vector<1x4x4x128xf32>
      tpu.vector_store %arg4[%c0_47, %c0_48, %c0_49, %c0_50], %66 {strides = array<i32>} : memref<1x4x4x128xf32, #tpu.memory_space<vmem>>, vector<1x4x4x128xf32>,
    } else {
    }
    %c0 = arith.constant 0 : index
    %c0_1 = arith.constant 0 : index
    %c0_2 = arith.constant 0 : index
    %c0_3 = arith.constant 0 : index
    %3 = vector.load %arg2[%c0, %c0_1, %c0_2, %c0_3] : memref<1x4x2x128xf32, #tpu.memory_space<vmem>>, vector<1x4x2x128xf32>
    %4 = vector.shape_cast %3 : vector<1x4x2x128xf32> to vector<4x2x128xf32>
    %c0_4 = arith.constant 0 : index
    %c0_5 = arith.constant 0 : index
    %c0_6 = arith.constant 0 : index
    %c0_7 = arith.constant 0 : index
    %5 = vector.load %arg3[%c0_4, %c0_5, %c0_6, %c0_7] : memref<1x4x2x128xf32, #tpu.memory_space<vmem>>, vector<1x4x2x128xf32>
    %6 = vector.shape_cast %5 : vector<1x4x2x128xf32> to vector<4x2x128xf32>
    %7 = math.absf %4 : vector<4x2x128xf32>
    %cst = arith.constant 0.000000e+00 : f32
    %8 = vector.broadcast %cst : f32 to vector<4x2x128xf32>
    %9 = arith.subf %8, %7 : vector<4x2x128xf32>
    %10 = math.exp %9 : vector<4x2x128xf32>
    %cst_8 = arith.constant 0.000000e+00 : f32
    %11 = vector.broadcast %cst_8 : f32 to vector<4x2x128xf32>
    %12 = arith.maximumf %4, %11 : vector<4x2x128xf32>
    %13 = arith.mulf %4, %6 : vector<4x2x128xf32>
    %14 = arith.subf %12, %13 : vector<4x2x128xf32>
    %15 = math.log1p %10 : vector<4x2x128xf32>
    %16 = arith.addf %14, %15 : vector<4x2x128xf32>
    %cst_9 = arith.constant 1.000000e+00 : f32
    %17 = vector.broadcast %cst_9 : f32 to vector<4x2x128xf32>
    %18 = arith.addf %17, %10 : vector<4x2x128xf32>
    %19 = tpu.reciprocal %18 {approx = true} : vector<4x2x128xf32> -> vector<4x2x128xf32>
    %20 = arith.mulf %18, %19 : vector<4x2x128xf32>
    %cst_10 = arith.constant 2.000000e+00 : f32
    %21 = vector.broadcast %cst_10 : f32 to vector<4x2x128xf32>
    %22 = arith.subf %21, %20 : vector<4x2x128xf32>
    %23 = arith.mulf %19, %22 : vector<4x2x128xf32>
    %cst_11 = arith.constant 0.000000e+00 : f32
    %24 = vector.broadcast %cst_11 : f32 to vector<4x2x128xf32>
    %25 = arith.cmpf oge, %4, %24 : vector<4x2x128xf32>
    %26 = arith.mulf %10, %23 : vector<4x2x128xf32>
    %27 = arith.select %25, %23, %26 : vector<4x2x128xi1>, vector<4x2x128xf32>
    %28 = arith.mulf %27, %6 : vector<4x2x128xf32>
    %29 = arith.addf %27, %6 : vector<4x2x128xf32>
    %cst_12 = arith.constant 2.000000e+00 : f32
    %30 = vector.broadcast %cst_12 : f32 to vector<4x2x128xf32>
    %31 = arith.mulf %30, %28 : vector<4x2x128xf32>
    %32 = arith.subf %29, %31 : vector<4x2x128xf32>
    %33 = arith.mulf %32, %32 : vector<4x2x128xf32>
    %34 = arith.mulf %33, %16 : vector<4x2x128xf32>
    %c0_13 = arith.constant 0 : index
    %c0_14 = arith.constant 0 : index
    %c0_15 = arith.constant 0 : index
    %c0_16 = arith.constant 0 : index
    %35 = vector.load %arg4[%c0_13, %c0_14, %c0_15, %c0_16] : memref<1x4x4x128xf32, #tpu.memory_space<vmem>>, vector<1x1x4x128xf32>
    %36 = vector.shape_cast %35 : vector<1x1x4x128xf32> to vector<4x128xf32>
    %cst_17 = arith.constant dense<0.000000e+00> : vector<4x128xf32>
    %37 = vector.multi_reduction <add>, %28, %cst_17 [1] : vector<4x2x128xf32> to vector<4x128xf32>
    %38 = arith.addf %36, %37 : vector<4x128xf32>
    %c0_18 = arith.constant 0 : index
    %c0_19 = arith.constant 0 : index
    %c0_20 = arith.constant 0 : index
    %c0_21 = arith.constant 0 : index
    %39 = vector.load %arg4[%c0_18, %c0_19, %c0_20, %c0_21] : memref<1x4x4x128xf32, #tpu.memory_space<vmem>>, vector<1x1x4x128xf32>
    %40 = vector.shape_cast %39 : vector<1x1x4x128xf32> to vector<4x128xf32>
    %41 = vector.shape_cast %38 : vector<4x128xf32> to vector<1x1x4x128xf32>
    tpu.vector_store %arg4[%c0_18, %c0_19, %c0_20, %c0_21], %41 {strides = array<i32>} : memref<1x4x4x128xf32, #tpu.memory_space<vmem>>, vector<1x1x4x128xf32>,
    %c0_22 = arith.constant 0 : index
    %c1 = arith.constant 1 : index
    %c0_23 = arith.constant 0 : index
    %c0_24 = arith.constant 0 : index
    %42 = vector.load %arg4[%c0_22, %c1, %c0_23, %c0_24] : memref<1x4x4x128xf32, #tpu.memory_space<vmem>>, vector<1x1x4x128xf32>
    %43 = vector.shape_cast %42 : vector<1x1x4x128xf32> to vector<4x128xf32>
    %cst_25 = arith.constant dense<0.000000e+00> : vector<4x128xf32>
    %44 = vector.multi_reduction <add>, %27, %cst_25 [1] : vector<4x2x128xf32> to vector<4x128xf32>
    %45 = arith.addf %43, %44 : vector<4x128xf32>
    %c0_26 = arith.constant 0 : index
    %c1_27 = arith.constant 1 : index
    %c0_28 = arith.constant 0 : index
    %c0_29 = arith.constant 0 : index
    %46 = vector.load %arg4[%c0_26, %c1_27, %c0_28, %c0_29] : memref<1x4x4x128xf32, #tpu.memory_space<vmem>>, vector<1x1x4x128xf32>
    %47 = vector.shape_cast %46 : vector<1x1x4x128xf32> to vector<4x128xf32>
    %48 = vector.shape_cast %45 : vector<4x128xf32> to vector<1x1x4x128xf32>
    tpu.vector_store %arg4[%c0_26, %c1_27, %c0_28, %c0_29], %48 {strides = array<i32>} : memref<1x4x4x128xf32, #tpu.memory_space<vmem>>, vector<1x1x4x128xf32>,
    %c0_30 = arith.constant 0 : index
    %c2 = arith.constant 2 : index
    %c0_31 = arith.constant 0 : index
    %c0_32 = arith.constant 0 : index
    %49 = vector.load %arg4[%c0_30, %c2, %c0_31, %c0_32] : memref<1x4x4x128xf32, #tpu.memory_space<vmem>>, vector<1x1x4x128xf32>
    %50 = vector.shape_cast %49 : vector<1x1x4x128xf32> to vector<4x128xf32>
    %cst_33 = arith.constant dense<0.000000e+00> : vector<4x128xf32>
    %51 = vector.multi_reduction <add>, %6, %cst_33 [1] : vector<4x2x128xf32> to vector<4x128xf32>
    %52 = arith.addf %50, %51 : vector<4x128xf32>
    %c0_34 = arith.constant 0 : index
    %c2_35 = arith.constant 2 : index
    %c0_36 = arith.constant 0 : index
    %c0_37 = arith.constant 0 : index
    %53 = vector.load %arg4[%c0_34, %c2_35, %c0_36, %c0_37] : memref<1x4x4x128xf32, #tpu.memory_space<vmem>>, vector<1x1x4x128xf32>
    %54 = vector.shape_cast %53 : vector<1x1x4x128xf32> to vector<4x128xf32>
    %55 = vector.shape_cast %52 : vector<4x128xf32> to vector<1x1x4x128xf32>
    tpu.vector_store %arg4[%c0_34, %c2_35, %c0_36, %c0_37], %55 {strides = array<i32>} : memref<1x4x4x128xf32, #tpu.memory_space<vmem>>, vector<1x1x4x128xf32>,
    %c0_38 = arith.constant 0 : index
    %c3 = arith.constant 3 : index
    %c0_39 = arith.constant 0 : index
    %c0_40 = arith.constant 0 : index
    %56 = vector.load %arg4[%c0_38, %c3, %c0_39, %c0_40] : memref<1x4x4x128xf32, #tpu.memory_space<vmem>>, vector<1x1x4x128xf32>
    %57 = vector.shape_cast %56 : vector<1x1x4x128xf32> to vector<4x128xf32>
    %cst_41 = arith.constant dense<0.000000e+00> : vector<4x128xf32>
    %58 = vector.multi_reduction <add>, %34, %cst_41 [1] : vector<4x2x128xf32> to vector<4x128xf32>
    %59 = arith.addf %57, %58 : vector<4x128xf32>
    %c0_42 = arith.constant 0 : index
    %c3_43 = arith.constant 3 : index
    %c0_44 = arith.constant 0 : index
    %c0_45 = arith.constant 0 : index
    %60 = vector.load %arg4[%c0_42, %c3_43, %c0_44, %c0_45] : memref<1x4x4x128xf32, #tpu.memory_space<vmem>>, vector<1x1x4x128xf32>
    %61 = vector.shape_cast %60 : vector<1x1x4x128xf32> to vector<4x128xf32>
    %62 = vector.shape_cast %59 : vector<4x128xf32> to vector<1x1x4x128xf32>
    tpu.vector_store %arg4[%c0_42, %c3_43, %c0_44, %c0_45], %62 {strides = array<i32>} : memref<1x4x4x128xf32, #tpu.memory_space<vmem>>, vector<1x1x4x128xf32>,
    return
  }
  func.func @transform_0(%arg0: i32, %arg1: i32) -> (i32, i32, i32, i32) {
    %c0_i32 = arith.constant 0 : i32
    %c0_i32_0 = arith.constant 0 : i32
    %c0_i32_1 = arith.constant 0 : i32
    return %arg0, %c0_i32, %arg1, %c0_i32_0 : i32, i32, i32, i32
  }
  func.func @transform_1(%arg0: i32, %arg1: i32) -> (i32, i32, i32, i32) {
    %c0_i32 = arith.constant 0 : i32
    %c0_i32_0 = arith.constant 0 : i32
    %c0_i32_1 = arith.constant 0 : i32
    return %arg0, %c0_i32, %arg1, %c0_i32_0 : i32, i32, i32, i32
  }
  func.func @transform_2(%arg0: i32, %arg1: i32) -> (i32, i32, i32, i32) {
    %c0_i32 = arith.constant 0 : i32
    %c0_i32_0 = arith.constant 0 : i32
    %c0_i32_1 = arith.constant 0 : i32
    %c0_i32_2 = arith.constant 0 : i32
    return %arg0, %c0_i32, %c0_i32_0, %c0_i32_1 : i32, i32, i32, i32
  }
}

</mosaic_0001>

<bundles_post_ra>
// kernel: tpu_custom_call.1
= control target key start
LH: loop header
LB: loop body
LE: loop exit
PB: predicated region body
PF: predicated region fallthrough
CT: control target
= control target key end

     0   :  { %7 = vsyncpa [#allocation3], 0  ;;  %s1400_s0 = inlined_call_operand.hbm [shape: f32[2,4,2,128], index: 0, kind: input, shape index: {}]   ;;  %s1401_s1 = inlined_call_operand.hbm [shape: f32[2,4,2,128], index: 1, kind: input, shape index: {}]   ;;  %s1402_s2 = inlined_call_operand.hbm [shape: f32[2,4,4,128], index: 2, kind: output, shape index: {}]  }
   0x1   :  { %9 = vsyncpa [#allocation3 + $0x1], 0 }
   0x2   :  { %10 = vsyncpa [#allocation6], 0 }
   0x3   :  { %12 = vsyncpa [#allocation6 + $0x1], 0 }
   0x4   :  { %13 = vsyncpa [#allocation4], 0 }
   0x5   :  { %15 = vsyncpa [#allocation4 + $0x1], 0  ;;  %s940_s9 = smov 0   ;;  %s942_s10 = smov 0  }
   0x6   :  { %s944_s11 = smov 0   ;;  %s946_s12 = smov 0  }
   0x7   :  { %s948_s13 = smov 0   ;;  %s950_s14 = smov 0  }
   0x8 LB: > { %s645_s15 = sadd.s32 4294967295, %s915_s14   ;;  %s646_s16 = sadd.s32 4294967294, %s915_s14   ;;  %s915_s14 = sphi %s950_s14, %s21_s14   ;;  %s911_s13 = sphi %s948_s13, %s1428_s13   ;;  %s907_s12 = sphi %s946_s12, %s1427_s12   ;;  %s903_s11 = sphi %s944_s11, %s1426_s11   ;;  %s899_s10 = sphi %s942_s10, %s1425_s10   ;;  %s895_s9 = sphi %s940_s9, %s1424_s9  }
   0x9   : > { %s33_s17 = sadd.s32 1, %s911_s13  ;;  %s42_s18 = sadd.s32 1, %s903_s11 }
   0xa   : > { %p35_p0 = scmp.ge.s32.totalorder %s33_s17, 2  ;;  %p49_p1 = scmp.ne.s32.totalorder %s903_s11, %s899_s10 }
   0xb   : > { %p50_p2 = scmp.eq.s32.totalorder %s915_s14, 0  ;;  %p55_p3 = scmp.ne.s32.totalorder %s899_s10, %s895_s9 }
   0xc   : > { %s1430_s17 = smov (%p35_p0, %s33_s17), 0  ;;  %p56_p5 = scmp.eq.s32.totalorder %s645_s15, 0 }
   0xd   : > { %p981_p4 = por %p50_p2, %p49_p1  ;;  %s37_s20 = ssub.s32 %s911_s13, %s1430_s17 }
   0xe   : > { %p107_p6 = scmp.eq.s32.totalorder %s645_s15, 1  ;;  %p40_p7 = scmp.eq.s32.totalorder %s37_s20, 0 }
   0xf   : > { %p987_p8 = por %p56_p5, %p55_p3  ;;  %p113_p10 = scmp.eq.s32.totalorder %s646_s16, 1 }
  0x10   : > { %p991_p9 = por %p107_p6, %p49_p1  ;;  %p690_p13 = scmp.lt.s32.totalorder %s915_s14, 2 }
  0x11   : > { %s1406_s21 = scalar_select %p987_p8, 1, 0 }
  0x12   : > { %s1407_s22 = scalar_select %p991_p9, 1, 0 }
  0x13   : > { %s996_s23 = scalar_select %p40_p7, %s903_s11, %s42_s18  }
  0x14   : > { %p998_p11 = por %p113_p10, %p55_p3  ;;  %s1005_s25 = sand.u32 1, %s903_s11  }
  0x15   : > { %s649_s26 = sshll.u32 %s1005_s25, 3  ;;  %s670_s27 = sshll.u32 %s911_s13, 7 }
  0x16   : > { %s1408_s24 = scalar_select %p998_p11, 1, 0 }
  0x17   : > { %s1014_s30 = scalar_lea.hbm %s1400_s0, %s670_s27  ;;  %s137_s3 = scalar_lea.vmem [#allocation2], %s649_s26 }
  0x18   : > { %s145_s4 = sshll.u32 %s137_s3, 4  ;;  %p1022_p0 = pnand %p690_p13, %p981_p4  ;;  %s1018_s4 = int_to_ptr.vmem [resolvable:$true] %s145_s4 }
  0x19   : > { %s134_s6 = scalar_lea.sflag [#allocation3], %s1005_s25  ;;  %s769_s7 = scalar_lea.hbm %s1014_s30, 128 }
  0x1a   : > { %p770_p2 = scmp.ne.s32.totalorder %s1014_s30, %s769_s7  ;;  %p771_p3 = pneg %p1022_p0 }
  0x1b   : > { %s774_s16 = scalar_lea.hbm %s1400_s0, 256  ;;  %p775_p4 = scmp.lt.u32.totalorder %s1014_s30, %s1400_s0 }
  0x1c   : > { %p772_p5 = pnand %p771_p3, %p770_p2  ;;  %p776_p7 = scmp.lt.u32.totalorder %s774_s16, %s769_s7 }
  0x1d   : > { %p778_p13 = scmp.lt.u32.totalorder %s769_s7, %s1014_s30 }
  0x1e   : > { %p773_p6 = pneg %p772_p5  ;;  %p777_p10 = por %p776_p7, %p775_p4 }
  0x20   : > { %p779_p12 = por %p778_p13, %p777_p10 }
  0x22   : > { %p780_p1 = pnand %p779_p12, %p773_p6 }
  0x24   : > { %783 = shalt.err (!%p780_p1)
}
  0x25   : > { %s784_s20 = scalar_lea.vmem %s1018_s4, 128  ;;  %s917_s28 = smov [#allocation2]  }
  0x26   : > { %p785_p2 = scmp.ne.s32.totalorder %s1018_s4, %s784_s20  ;;  %s789_s29 = sshll.u32 %s917_s28, 4  ;;  %s790_s29 = int_to_ptr.vmem [resolvable:$false] %s789_s29 }
  0x27   : > { %s791_s3 = scalar_lea.vmem %s790_s29, 256  ;;  %p792_p9 = scmp.lt.s32.totalorder %s1018_s4, %s790_s29 }
  0x28   : > { %p787_p5 = pnand %p785_p2, %p771_p3  ;;  %p793_p4 = scmp.lt.s32.totalorder %s791_s3, %s784_s20 }
  0x2a   : > { %p788_p11 = pneg %p787_p5  ;;  %p794_p7 = por %p793_p4, %p792_p9 }
  0x2c   : > { %p795_p10 = pnand %p794_p7, %p788_p11 }
  0x2e   : > { %798 = shalt.err (!%p795_p10)
}
  0x2f   : > { %s918_s7 = smov 32   ;;  %s919_s8 = smov 2  }
  0x30   : > { %682 = dma.hbm_to_vmem [thread:$0]  (!%p1022_p0), %s1014_s30, 128, %s1018_s4, %s134_s6, %s918_s7, %s918_s7, %s919_s8  }
  0x31   : > { %p175_p9 = scmp.lt.s32.totalorder %s915_s14, 3  ;;  %s1064_s18 = scalar_lea.hbm %s1401_s1, %s670_s27 }
  0x32   : > { %p1410_p11 = scmp.ge.s32.totalorder %s915_s14, 1  ;;  %s159_s20 = scalar_lea.vmem [#allocation5], %s649_s26 }
  0x33   : > { %s167_s28 = sshll.u32 %s159_s20, 4  ;;  %s156_s30 = scalar_lea.sflag [#allocation6], %s1005_s25  ;;  %s1074_s28 = int_to_ptr.vmem [resolvable:$true] %s167_s28 }
  0x34   : > { %p1068_p12 = pnand %p1410_p11, %p175_p9  ;;  %s799_s4 = scalar_lea.hbm %s1064_s18, 128 }
  0x35   : > { %p800_p1 = scmp.ne.s32.totalorder %s1064_s18, %s799_s4  ;;  %s804_s29 = scalar_lea.hbm %s1401_s1, 256 }
  0x36   : > { %p805_p2 = scmp.lt.u32.totalorder %s1064_s18, %s1401_s1  ;;  %p806_p5 = scmp.lt.u32.totalorder %s804_s29, %s799_s4 }
  0x37   : > { %p802_p6 = pnand %p800_p1, %p771_p3  ;;  %p808_p7 = scmp.lt.u32.totalorder %s799_s4, %s1064_s18 }
  0x38   : > { %p807_p4 = por %p806_p5, %p805_p2 }
  0x39   : > { %p803_p13 = pneg %p802_p6 }
  0x3a   : > { %p809_p10 = por %p808_p7, %p807_p4 }
  0x3c   : > { %p810_p9 = pnand %p809_p10, %p803_p13 }
  0x3e   : > { %813 = shalt.err (!%p810_p9)
}
  0x3f   : > { %s814_s26 = scalar_lea.vmem %s1074_s28, 128  ;;  %s920_s16 = smov [#allocation5]  }
  0x40   : > { %p815_p11 = scmp.ne.s32.totalorder %s1074_s28, %s814_s26  ;;  %s819_s20 = sshll.u32 %s920_s16, 4  ;;  %s820_s20 = int_to_ptr.vmem [resolvable:$false] %s819_s20 }
  0x41   : > { %s821_s27 = scalar_lea.vmem %s820_s20, 256  ;;  %p822_p8 = scmp.lt.s32.totalorder %s1074_s28, %s820_s20 }
  0x42   : > { %p817_p1 = pnand %p815_p11, %p771_p3  ;;  %p823_p2 = scmp.lt.s32.totalorder %s821_s27, %s814_s26 }
  0x44   : > { %p818_p6 = pneg %p817_p1  ;;  %p824_p5 = por %p823_p2, %p822_p8 }
  0x46   : > { %p825_p4 = pnand %p824_p5, %p818_p6 }
  0x48   : > { %828 = shalt.err (!%p825_p4)
}
  0x49   : > { %685 = dma.hbm_to_vmem [thread:$0]  (!%p1022_p0), %s1064_s18, 128, %s1074_s28, %s156_s30, %s918_s7, %s918_s7, %s919_s8  }
  0x4a   : > { %179 = sbr.rel (%p1068_p12) target bundleno = 185 (0xb9), region = 28  ;;  %s1108_s4 = sand.u32 (!%p1068_p12), 1, %s899_s10  }
  0x4b   : > { %s656_s6 = sshll.u32 (!%p1068_p12), %s1108_s4, 3  ;;  %s182_s29 = scalar_lea.sflag (!%p1068_p12), [#allocation3], %s1108_s4 }
  0x4c   : > { %s185_s5 = scalar_lea.vmem (!%p1068_p12), [#allocation2], %s656_s6  ;;  %p1412_p8 = scmp.ne.s32.totalorder (!%p1068_p12), %s1406_s21, 0 }
  0x51   : > { %882 = dma.done.wait (%p1412_p8), %s182_s29, 128  }
  0x52   : > { %884 = vsyncadd (%p1412_p8), %s182_s29, 4294967168  ;;  %s191_s25 = scalar_lea.sflag [#allocation6], %s1108_s4  ;;  %s1117_s7 = scalar_lea.vmem [#allocation5], %s656_s6 }
  0x53   : > { %886 = dma.done.wait (%p1412_p8), %s191_s25, 128  }
  0x54   : > { %888 = vsyncadd (%p1412_p8), %s191_s25, 4294967168  ;;  %s658_s8 = sshll.u32 %s1108_s4, 4  ;;  %v921_v0 = vmov 0.0   ;;  %v1130_v1 = vld [vmem:[%s185_s5] sm:$0x3]  ;;  %vm361_vm0 = vcmask 1041408  }
  0x55   : > { %s1124_s18 = scalar_lea.vmem [#allocation7], %s658_s8  ;;  %v1132_v2 = vld [vmem:[%s185_s5 + $0x2] sm:$0x3]  ;;  %v1134_v3 = vld [vmem:[%s185_s5 + $0x4] sm:$0x3]  ;;  %vm394_vm1 = vcmask 1041409  }
  0x56   : > { %224 = vst [vmem:[%s1124_s18] sm:$0xf] %v921_v0  ;;  %225 = vst [vmem:[%s1124_s18 + $0x4] sm:$0xf] %v921_v0  ;;  %v1136_v4 = vld [vmem:[%s185_s5 + $0x6] sm:$0x3]  ;;  %vm396_vm2 = vcmask 1042434  }
  0x57   : > { %226 = vst [vmem:[%s1124_s18 + $0x8] sm:$0xf] %v921_v0  ;;  %227 = vst [vmem:[%s1124_s18 + $0xc] sm:$0xf] %v921_v0  ;;  %v236_v5 = vand.u32 2147483647, %v1130_v1 }
  0x58   : > { %v237_v6 = vand.u32 2147483647, %v1132_v2  ;;  %v238_v7 = vand.u32 2147483647, %v1134_v3  ;;  %v239_v8 = vand.u32 2147483647, %v1136_v4 }
  0x59   : > { %v1143_v9 = vld [vmem:[%s1117_s7] sm:$0x3]  ;;  %v240_v10 = vsub.f32 0.0, %v236_v5  ;;  %v1146_v11 = vld [vmem:[%s1117_s7 + $0x2] sm:$0x3]  ;;  %vm398_vm3 = vcmask 1043459  }
  0x5a   : > { %v241_v12 = vsub.f32 0.0, %v237_v6  ;;  %v242_v13 = vsub.f32 0.0, %v238_v7  ;;  %v243_v14 = vsub.f32 0.0, %v239_v8  ;;  %v1149_v15 = vld [vmem:[%s1117_s7 + $0x4] sm:$0x3]  ;;  %v445_v17 = vsel %vm361_vm0, %v1143_v9, 0.0 }
  0x5b   : > { %v244_v16 = vmul.f32 1.442695, %v240_v10  ;;  %v452_v18 = vsel %vm361_vm0, %v1146_v11, 0.0  ;;  %v1156_v22 = vld [vmem:[%s1117_s7 + $0x6] sm:$0x3]  ;;  %v446_v23 = vrot.slane %v445_v17, 4  ;;  %v256_v63 = vmul.f32 %v1143_v9, %v1130_v1 }
  0x5c   : > { %v246_v19 = vmul.f32 1.442695, %v241_v12  ;;  %v248_v20 = vmul.f32 1.442695, %v242_v13  ;;  %v250_v21 = vmul.f32 1.442695, %v243_v14  ;;  %v257_v0 = vmul.f32 %v1146_v11, %v1132_v2 }
  0x5d   : > { %745 = vpow2.f32 %v244_v16  ;;  %v453_v24 = vrot.slane %v452_v18, 4  ;;  %v459_v25 = vsel %vm361_vm0, %v1149_v15, 0.0  ;;  %v466_v27 = vsel %vm361_vm0, %v1156_v22, 0.0  ;;  %s672_s21 = sshll.u32 %s907_s12, 8  ;;  %s537_s19 = sshll.u32 %s1124_s18, 4  ;;  %s1350_s19 = int_to_ptr.vmem [resolvable:$true] %s537_s19 }
  0x5e   : > { %747 = vpow2.f32 %v246_v19  ;;  %v460_v26 = vrot.slane %v459_v25, 4  ;;  %v447_v28 = vadd.f32 %v446_v23, %v445_v17  ;;  %v467_v30 = vrot.slane %v466_v27, 4  ;;  %v661_v53 = vld [vmem:[%s1124_s18 + $0x8] sm:$0xf]  ;;  %s1348_s3 = scalar_lea.hbm %s1402_s2, %s672_s21  ;;  %s524_s12 = scalar_lea.sflag [#allocation4], %s1108_s4 }
  0x5f   : > { %749 = vpow2.f32 %v248_v20  ;;  %v454_v29 = vadd.f32 %v453_v24, %v452_v18  ;;  %v252_v5 = vmax.f32 %v1130_v1, 0.0  ;;  %v258_v6 = vmul.f32 %v1149_v15, %v1134_v3  ;;  %s829_s15 = scalar_lea.vmem %s1350_s19, 256  ;;  %p1421_p3 = scmp.ne.s32.totalorder %s1407_s22, 0 }
  0x60   : > { %751 = vpow2.f32 %v250_v21  ;;  %v461_v31 = vadd.f32 %v460_v26, %v459_v25  ;;  %v448_v32 = vrot.slane %v447_v28, 2  ;;  %v468_v34 = vadd.f32 %v467_v30, %v466_v27  ;;  %p830_p0 = scmp.ne.s32.totalorder %s1350_s19, %s829_s15  ;;  %s922_s26 = smov [#allocation7]  }
  0x61   : > { %v455_v33 = vrot.slane %v454_v29, 2  ;;  %v253_v8 = vmax.f32 %v1132_v2, 0.0  ;;  %v254_v10 = vmax.f32 %v1134_v3, 0.0  ;;  %v255_v12 = vmax.f32 %v1136_v4, 0.0  ;;  %s833_s16 = sshll.u32 %s922_s26, 4  ;;  %s834_s16 = int_to_ptr.vmem [resolvable:$false] %s833_s16 }
  0x62   : > { %v462_v35 = vrot.slane %v461_v31, 2  ;;  %v449_v36 = vadd.f32 %v448_v32, %v447_v28  ;;  %v469_v38 = vrot.slane %v468_v34, 2  ;;  %v259_v13 = vmul.f32 %v1156_v22, %v1136_v4  ;;  %p831_p12 = pnand %p830_p0, %p1421_p3  ;;  %s835_s20 = scalar_lea.vmem %s834_s16, 512 }
  0x63   : > { %v456_v37 = vadd.f32 %v455_v33, %v454_v29  ;;  %vm324_vm4 = vcmp.ge.f32.partialorder %v1130_v1, 0.0  ;;  %vm325_vm5 = vcmp.ge.f32.partialorder %v1132_v2, 0.0  ;;  %vm326_vm6 = vcmp.ge.f32.partialorder %v1134_v3, 0.0  ;;  %p836_p7 = scmp.lt.s32.totalorder %s1350_s19, %s834_s16  ;;  %p837_p10 = scmp.lt.s32.totalorder %s835_s20, %s829_s15 }
  0x64   : > { %v463_v39 = vadd.f32 %v462_v35, %v461_v31  ;;  %v450_v40 = vrot.slane %v449_v36, 1  ;;  %v470_v42 = vadd.f32 %v469_v38, %v468_v34  ;;  %v1198_v19 = vsub.f32 %v252_v5, %v256_v63  ;;  %p832_p13 = pneg %p831_p12 }
  0x65   : > { %v457_v41 = vrot.slane %v456_v37, 1  ;;  %vm327_vm7 = vcmp.ge.f32.partialorder %v1136_v4, 0.0  ;;  %v1202_v25 = vsub.f32 %v253_v8, %v257_v0  ;;  %v1204_v26 = vsub.f32 %v254_v10, %v258_v6  ;;  %p838_p9 = por %p837_p10, %p836_p7 }
  0x66   : > { %v464_v43 = vrot.slane %v463_v39, 1  ;;  %v451_v45 = vadd.f32 %v450_v40, %v449_v36  ;;  %v471_v47 = vrot.slane %v470_v42, 1  ;;  %v1206_v27 = vsub.f32 %v255_v12, %v259_v13 }
  0x67   : > { %v1162_v44 = vpop.eup %745  ;;  %v458_v46 = vadd.f32 %v457_v41, %v456_v37  ;;  %p839_p11 = pnand %p838_p9, %p832_p13 }
  0x68   : > { %v1164_v48 = vpop.eup %747  ;;  %v264_v49 = vadd.f32 1.0, %v1162_v44  ;;  %v465_v50 = vadd.f32 %v464_v43, %v463_v39  ;;  %v472_v54 = vadd.f32 %v471_v47, %v470_v42  ;;  %v267_v62 = vmul.f32 -0.5, %v1162_v44 }
  0x69   : > { %v1167_v51 = vpop.eup %749  ;;  %v273_v52 = vadd.f32 1.0, %v1164_v48  ;;  %v477_v55 = vsel %vm394_vm1, %v458_v46, %v451_v45  ;;  %v276_v7 = vmul.f32 -0.5, %v1164_v48  ;;  %v270_v16 = vand.u32 2147483647, %v1162_v44 }
  0x6a   : > { %v1172_v56 = vpop.eup %751  ;;  %v282_v57 = vadd.f32 1.0, %v1167_v51  ;;  %753 = vrcp.f32 %v264_v49  ;;  %v478_v58 = vsel %vm396_vm2, %v465_v50, %v477_v55  ;;  %v268_v14 = vadd.f32 1.0, %v267_v62 }
  0x6b   : > { %v291_v59 = vadd.f32 1.0, %v1172_v56  ;;  %755 = vrcp.f32 %v273_v52  ;;  %v479_v60 = vsel %vm398_vm3, %v472_v54, %v478_v58  ;;  %v285_v17 = vmul.f32 -0.5, %v1167_v51 }
  0x6c   : > { %757 = vrcp.f32 %v282_v57  ;;  %v481_v61 = vadd.f32 %v661_v53, %v479_v60  ;;  %v277_v20 = vadd.f32 1.0, %v276_v7  ;;  %v294_v21 = vmul.f32 -0.5, %v1172_v56 }
  0x6d   : > { %759 = vrcp.f32 %v291_v59  ;;  %v269_v30 = vmul.f32 %v1162_v44, %v268_v14  ;;  %vm1209_vm8 = vcmp.lt.f32.partialorder %v270_v16, 0.0004427343  ;;  %v279_v32 = vand.u32 2147483647, %v1164_v48 }
  0x6e   : > { %662 = vst [vmem:[%s1124_s18 + $0x8] sm:$0xf] %v481_v61  ;;  %761 = vlog2.f32 %v264_v49  ;;  %v286_v36 = vadd.f32 1.0, %v285_v17  ;;  %v288_v37 = vand.u32 2147483647, %v1167_v51  ;;  %v1216_v41 = vmul.f32 %v1164_v48, %v277_v20 }
  0x6f   : > { %763 = vlog2.f32 %v273_v52  ;;  %v295_v42 = vadd.f32 1.0, %v294_v21  ;;  %vm1221_vm9 = vcmp.lt.f32.partialorder %v279_v32, 0.0004427343 }
  0x70   : > { %765 = vlog2.f32 %v282_v57  ;;  %vm1229_vm10 = vcmp.lt.f32.partialorder %v288_v37, 0.0004427343 }
  0x71   : > { %767 = vlog2.f32 %v291_v59  ;;  %v1237_v5 = vmul.f32 %v1172_v56, %v295_v42 }
  0x74   : > { %v754_v18 = vpop.eup %753 }
  0x75   : > { %v756_v23 = vpop.eup %755  ;;  %v312_v24 = vmul.f32 %v754_v18, %v264_v49  ;;  %v297_v49 = vand.u32 2147483647, %v1172_v56 }
  0x76   : > { %v758_v28 = vpop.eup %757  ;;  %v313_v29 = vmul.f32 %v756_v23, %v273_v52 }
  0x77   : > { %v760_v33 = vpop.eup %759  ;;  %v314_v34 = vmul.f32 %v758_v28, %v282_v57  ;;  %v316_v35 = vsub.f32 2.0, %v312_v24  ;;  %vm1290_vm11 = vcmp.lt.f32.partialorder %v297_v49, 0.0004427343 }
  0x78   : > { %v762_v38 = vpop.eup %761  ;;  %v315_v39 = vmul.f32 %v760_v33, %v291_v59  ;;  %v317_v40 = vsub.f32 2.0, %v313_v29  ;;  %v1227_v59 = vmul.f32 %v1167_v51, %v286_v36 }
  0x79   : > { %v764_v43 = vpop.eup %763  ;;  %v318_v45 = vsub.f32 2.0, %v314_v34  ;;  %v320_v46 = vmul.f32 %v754_v18, %v316_v35  ;;  %v266_v47 = vmul.f32 0.6931472, %v762_v38 }
  0x7a   : > { %v766_v50 = vpop.eup %765  ;;  %v319_v52 = vsub.f32 2.0, %v315_v39  ;;  %v321_v53 = vmul.f32 %v756_v23, %v317_v40  ;;  %v1219_v54 = vmul.f32 0.6931472, %v764_v43 }
  0x7b   : > { %v322_v57 = vmul.f32 %v758_v28, %v318_v45  ;;  %v328_v58 = vmul.f32 %v1162_v44, %v320_v46  ;;  %v768_v61 = vpop.eup %767  ;;  %v1234_v0 = vmul.f32 0.6931472, %v766_v50  ;;  %v272_v7 = vsel %vm1209_vm8, %v269_v30, %v266_v47 }
  0x7c   : > { %v323_v62 = vmul.f32 %v760_v33, %v319_v52  ;;  %v329_v63 = vmul.f32 %v1164_v48, %v321_v53  ;;  %v281_v8 = vsel %vm1221_vm9, %v1216_v41, %v1219_v54  ;;  %v1265_v16 = vmul.f32 0.6931472, %v768_v61 }
  0x7d   : > { %v330_v6 = vmul.f32 %v1167_v51, %v322_v57  ;;  %v1242_v44 = vsel %vm324_vm4, %v320_v46, %v328_v58  ;;  %v290_v3 = vsel %vm1229_vm10, %v1227_v59, %v1234_v0  ;;  %v1285_v29 = vadd.f32 %v272_v7, %v1198_v19 }
  0x7e   : > { %v331_v48 = vmul.f32 %v1172_v56, %v323_v62  ;;  %v1253_v10 = vsel %vm325_vm5, %v321_v53, %v329_v63  ;;  %v336_v51 = vmul.f32 %v1242_v44, %v1143_v9  ;;  %v405_v1 = vsel %vm361_vm0, %v1242_v44, 0.0 }
  0x7f   : > { %v1261_v12 = vsel %vm326_vm6, %v322_v57, %v330_v6  ;;  %v337_v13 = vmul.f32 %v1253_v10, %v1146_v11  ;;  %v406_v14 = vrot.slane %v405_v1, 4  ;;  %v412_v4 = vsel %vm361_vm0, %v1253_v10, 0.0 }
  0x80   : > { %v1269_v2 = vsel %vm327_vm7, %v323_v62, %v331_v48  ;;  %v338_v56 = vmul.f32 %v1261_v12, %v1149_v15  ;;  %v362_v17 = vsel %vm361_vm0, %v336_v51, 0.0  ;;  %v1287_v30 = vmul.f32 2.0, %v336_v51 }
  0x81   : > { %v339_v18 = vmul.f32 %v1269_v2, %v1156_v22  ;;  %v363_v20 = vrot.slane %v362_v17, 4  ;;  %v369_v21 = vsel %vm361_vm0, %v337_v13, 0.0  ;;  %v407_v28 = vadd.f32 %v406_v14, %v405_v1 }
  0x82   : > { %v370_v23 = vrot.slane %v369_v21, 4  ;;  %v376_v24 = vsel %vm361_vm0, %v338_v56, 0.0  ;;  %v413_v37 = vrot.slane %v412_v4, 4  ;;  %v419_v19 = vsel %vm361_vm0, %v1261_v12, 0.0 }
  0x83   : > { %v364_v31 = vadd.f32 %v363_v20, %v362_v17  ;;  %v377_v32 = vrot.slane %v376_v24, 4  ;;  %v383_v33 = vsel %vm361_vm0, %v339_v18, 0.0  ;;  %v408_v36 = vrot.slane %v407_v28, 2 }
  0x84   : > { %v371_v34 = vadd.f32 %v370_v23, %v369_v21  ;;  %v384_v35 = vrot.slane %v383_v33, 4  ;;  %v426_v42 = vsel %vm361_vm0, %v1269_v2, 0.0  ;;  %v414_v47 = vadd.f32 %v413_v37, %v412_v4 }
  0x85   : > { %v365_v39 = vrot.slane %v364_v31, 2  ;;  %v378_v40 = vadd.f32 %v377_v32, %v376_v24  ;;  %v409_v46 = vadd.f32 %v408_v36, %v407_v28  ;;  %v420_v53 = vrot.slane %v419_v19, 4 }
  0x86   : > { %v372_v43 = vrot.slane %v371_v34, 2  ;;  %v385_v45 = vadd.f32 %v384_v35, %v383_v33  ;;  %v427_v57 = vrot.slane %v426_v42, 4  ;;  %v415_v62 = vrot.slane %v414_v47, 2 }
  0x87   : > { %v366_v50 = vadd.f32 %v365_v39, %v364_v31  ;;  %v379_v52 = vrot.slane %v378_v40, 2  ;;  %v410_v61 = vrot.slane %v409_v46, 1  ;;  %v421_v7 = vadd.f32 %v420_v53, %v419_v19  ;;  %v360_v39 = vld [vmem:[%s1124_s18] sm:$0xf] }
  0x88   : > { %v373_v49 = vadd.f32 %v372_v43, %v371_v34  ;;  %v386_v58 = vrot.slane %v385_v45, 2  ;;  %v428_v48 = vadd.f32 %v427_v57, %v426_v42  ;;  %v345_v51 = vmul.f32 2.0, %v337_v13 }
  0x89   : > { %v367_v63 = vrot.slane %v366_v50, 1  ;;  %v380_v6 = vadd.f32 %v379_v52, %v378_v40  ;;  %v416_v17 = vadd.f32 %v415_v62, %v414_v47  ;;  %v422_v4 = vrot.slane %v421_v7, 2 }
  0x8a   : > { %v374_v1 = vrot.slane %v373_v49, 1  ;;  %v387_v14 = vadd.f32 %v386_v58, %v385_v45  ;;  %v429_v23 = vrot.slane %v428_v48, 2  ;;  %v411_v31 = vadd.f32 %v410_v61, %v409_v46  ;;  %v659_v58 = vld [vmem:[%s1124_s18 + $0x4] sm:$0xf] }
  0x8b   : > { %v368_v20 = vadd.f32 %v367_v63, %v366_v50  ;;  %v381_v21 = vrot.slane %v380_v6, 1  ;;  %v417_v32 = vrot.slane %v416_v17, 1  ;;  %v346_v33 = vmul.f32 2.0, %v338_v56 }
  0x8c   : > { %v375_v24 = vadd.f32 %v374_v1, %v373_v49  ;;  %v388_v28 = vrot.slane %v387_v14, 1  ;;  %v423_v35 = vadd.f32 %v422_v4, %v421_v7  ;;  %v430_v36 = vadd.f32 %v429_v23, %v428_v48 }
  0x8d   : > { %v382_v34 = vadd.f32 %v381_v21, %v380_v6  ;;  %v347_v37 = vmul.f32 2.0, %v339_v18  ;;  %v418_v19 = vadd.f32 %v417_v32, %v416_v17  ;;  %v299_v56 = vsel %vm1290_vm11, %v1237_v5, %v1265_v16 }
  0x8e   : > { %v389_v13 = vadd.f32 %v388_v28, %v387_v14  ;;  %v395_v40 = vsel %vm394_vm1, %v375_v24, %v368_v20  ;;  %v424_v43 = vrot.slane %v423_v35, 1  ;;  %v431_v45 = vrot.slane %v430_v36, 1 }
  0x8f   : > { %v397_v42 = vsel %vm396_vm2, %v382_v34, %v395_v40  ;;  %v437_v18 = vsel %vm394_vm1, %v418_v19, %v411_v31  ;;  %v340_v47 = vadd.f32 %v1242_v44, %v1143_v9  ;;  %v341_v50 = vadd.f32 %v1253_v10, %v1146_v11 }
  0x90   : > { %v399_v46 = vsel %vm398_vm3, %v389_v13, %v397_v42  ;;  %v425_v53 = vadd.f32 %v424_v43, %v423_v35  ;;  %v432_v57 = vadd.f32 %v431_v45, %v430_v36  ;;  %v342_v49 = vadd.f32 %v1261_v12, %v1149_v15 }
  0x91   : > { %v401_v52 = vadd.f32 %v399_v46, %v360_v39  ;;  %v301_v5 = vadd.f32 %v281_v8, %v1202_v25  ;;  %v343_v9 = vadd.f32 %v1269_v2, %v1156_v22  ;;  %v348_v44 = vsub.f32 %v340_v47, %v1287_v30 }
  0x92   : > { %v349_v11 = vsub.f32 %v341_v50, %v345_v51  ;;  %v438_v10 = vsel %vm396_vm2, %v425_v53, %v437_v18  ;;  %v302_v15 = vadd.f32 %v290_v3, %v1204_v26  ;;  %v303_v41 = vadd.f32 %v299_v56, %v1206_v27 }
  0x93   : > { %402 = vst [vmem:[%s1124_s18] sm:$0xf] %v401_v52  ;;  %v350_v25 = vsub.f32 %v342_v49, %v346_v33  ;;  %v439_v54 = vsel %vm398_vm3, %v432_v57, %v438_v10  ;;  %v351_v22 = vsub.f32 %v343_v9, %v347_v37  ;;  %v352_v55 = vmul.f32 %v348_v44, %v348_v44  ;;  %v663_v37 = vld [vmem:[%s1124_s18 + $0xc] sm:$0xf] }
  0x94   : > { %v353_v8 = vmul.f32 %v349_v11, %v349_v11  ;;  %v441_v12 = vadd.f32 %v659_v58, %v439_v54 }
  0x95   : > { %v354_v16 = vmul.f32 %v350_v25, %v350_v25  ;;  %v355_v2 = vmul.f32 %v351_v22, %v351_v22  ;;  %v356_v30 = vmul.f32 %v352_v55, %v1285_v29 }
  0x96   : > { %v357_v38 = vmul.f32 %v353_v8, %v301_v5  ;;  %660 = vst [vmem:[%s1124_s18 + $0x4] sm:$0xf] %v441_v12 }
  0x97   : > { %v358_v60 = vmul.f32 %v354_v16, %v302_v15  ;;  %v359_v61 = vmul.f32 %v355_v2, %v303_v41  ;;  %v485_v59 = vsel %vm361_vm0, %v356_v30, 0.0 }
  0x98   : > { %v492_v26 = vsel %vm361_vm0, %v357_v38, 0.0  ;;  %v486_v27 = vrot.slane %v485_v59, 4 }
  0x99   : > { %v493_v0 = vrot.slane %v492_v26, 4  ;;  %v499_v3 = vsel %vm361_vm0, %v358_v60, 0.0  ;;  %v506_v63 = vsel %vm361_vm0, %v359_v61, 0.0 }
  0x9a   : > { %v500_v62 = vrot.slane %v499_v3, 4  ;;  %v487_v6 = vadd.f32 %v486_v27, %v485_v59  ;;  %v507_v48 = vrot.slane %v506_v63, 4 }
  0x9b   : > { %v494_v7 = vadd.f32 %v493_v0, %v492_v26 }
  0x9c   : > { %v501_v51 = vadd.f32 %v500_v62, %v499_v3  ;;  %v488_v29 = vrot.slane %v487_v6, 2  ;;  %v508_v14 = vadd.f32 %v507_v48, %v506_v63 }
  0x9d   : > { %v495_v1 = vrot.slane %v494_v7, 2 }
  0x9e   : > { %v502_v17 = vrot.slane %v501_v51, 2  ;;  %v489_v20 = vadd.f32 %v488_v29, %v487_v6  ;;  %v509_v4 = vrot.slane %v508_v14, 2 }
  0x9f   : > { %v496_v21 = vadd.f32 %v495_v1, %v494_v7 }
  0xa0   : > { %v503_v23 = vadd.f32 %v502_v17, %v501_v51  ;;  %v490_v24 = vrot.slane %v489_v20, 1  ;;  %v510_v31 = vadd.f32 %v509_v4, %v508_v14 }
  0xa1   : > { %v497_v28 = vrot.slane %v496_v21, 1 }
  0xa2   : > { %v504_v32 = vrot.slane %v503_v23, 1  ;;  %v491_v33 = vadd.f32 %v490_v24, %v489_v20  ;;  %v511_v35 = vrot.slane %v510_v31, 1 }
  0xa3   : > { %v498_v34 = vadd.f32 %v497_v28, %v496_v21 }
  0xa4   : > { %v505_v36 = vadd.f32 %v504_v32, %v503_v23  ;;  %v512_v39 = vadd.f32 %v511_v35, %v510_v31 }
  0xa5   : > { %v517_v13 = vsel %vm394_vm1, %v498_v34, %v491_v33 }
  0xa6   : > { %v518_v40 = vsel %vm396_vm2, %v505_v36, %v517_v13 }
  0xa7   : > { %v519_v19 = vsel %vm398_vm3, %v512_v39, %v518_v40 }
  0xa8   : > { %v521_v42 = vadd.f32 %v663_v37, %v519_v19 }
  0xaa   : > { %664 = vst [vmem:[%s1124_s18 + $0xc] sm:$0xf] %v521_v42 }
  0xab   : > { %842 = shalt.err (!%p839_p11)
}
  0xac   : > { %s843_s27 = scalar_lea.hbm %s1348_s3, 256  ;;  %s847_s5 = scalar_lea.hbm %s1402_s2, 512 }
  0xad   : > { %p844_p1 = scmp.ne.s32.totalorder %s1348_s3, %s843_s27  ;;  %p848_p5 = scmp.lt.u32.totalorder %s1348_s3, %s1402_s2 }
  0xae   : > { %p849_p4 = scmp.lt.u32.totalorder %s847_s5, %s843_s27  ;;  %p851_p0 = scmp.lt.u32.totalorder %s843_s27, %s1348_s3 }
  0xaf   : > { %p845_p6 = pnand %p844_p1, %p1421_p3 }
  0xb0   : > { %p850_p8 = por %p849_p4, %p848_p5 }
  0xb1   : > { %p846_p2 = pneg %p845_p6 }
  0xb2   : > { %p852_p12 = por %p851_p0, %p850_p8 }
  0xb4   : > { %p853_p13 = pnand %p852_p12, %p846_p2 }
  0xb6   : > { %856 = shalt.err (!%p853_p13)
}
  0xb7   : > { %s923_s8 = smov 64   ;;  %s924_s18 = smov 4  }
  0xb8   : > { %677 = dma.vmem_to_hbm [thread:$0]  (%p1421_p3), %s1350_s19, 256, %s1348_s3, %s524_s12, %s923_s8, %s923_s8, %s924_s18  }
  0xb9 PF: > { %s552_s21 = sand.u32 1, %s895_s9   ;;  %p1422_p7 = scmp.ne.s32.totalorder %s1408_s24, 0 }
  0xba   : > { %p1423_p10 = scmp.ge.s32.totalorder %s915_s14, 2  ;;  %s553_s28 = scalar_lea.sflag [#allocation4], %s552_s21 }
  0xbc   : > { %p687_p9 = pnand %p1423_p10, %p1422_p7 }
  0xbe   : > { %890 = dma.done.wait (!%p687_p9), %s553_s28, 256  }
  0xbf   : > { %892 = vsyncadd (!%p687_p9), %s553_s28, 4294967040  ;;  %s21_s14 = sadd.s32 1, %s915_s14   ;;  %s1424_s9 = smov %s899_s10 }
  0xc0   : > { %p18_p11 = scmp.ge.s32.totalorder %s21_s14, 4   ;;  %s1425_s10 = smov %s903_s11 }
  0xc1   : > { %s1426_s11 = smov %s996_s23  ;;  %s1427_s12 = smov %s911_s13 }
  0xc2   : > { %s1428_s13 = smov %s1430_s17  ;;  %20 = sbr.rel (!%p18_p11) target bundleno = 8 (0x8), region = 93 }
  0xc9   :  { %558 = vsyncpa [#allocation3], 1 }
  0xca   :  { %560 = vsyncpa [#allocation3 + $0x1], 1 }
  0xcb   :  { %561 = vsyncpa [#allocation6], 1 }
  0xcc   :  { %563 = vsyncpa [#allocation6 + $0x1], 1 }
  0xcd   :  { %564 = vsyncpa [#allocation4], 1 }
  0xce   :  { %566 = vsyncpa [#allocation4 + $0x1], 1 }

</bundles_post_ra>
